<compile_context>
chip_gen: v5e
topology: v5e:2x2
jax: 0.10.0
libtpu: 0.0.40
codegen_flags: <defaults>
</compile_context>

<pallas_src>
import functools

import jax
import jax.numpy as jnp
from jax import lax
from jax.experimental import pallas as pl
from jax.experimental.pallas import tpu as pltpu


def linear_relu_argmax_kernel(params_ref, x_ref, o_ref, *, B, IN, OUT):
    # params_ref: SMEM f32[(OUT*IN + OUT,)]  = [W[0,0],W[0,1],...,W[OUT-1,IN-1], b[0..OUT-1]]
    # x_ref:      VMEM f32[(B*IN, S)]        native layout flattened; S on lanes
    # o_ref:      VMEM i32[(1, B*OUT)]       argmax indices over S
    S = x_ref.shape[1]

    # Linear(2 -> 3): fully unrolled scalar-operand VPU FMAs (no MXU, no
    # vector-broadcast weights).  Each row is a (1, S) slice of the single
    # input vreg tile; weights/bias are scalar reads from SMEM.
    rows = []
    for b in range(B):
        for o in range(OUT):
            acc = x_ref[b * IN: b * IN + 1, :] * params_ref[o * IN + 0]
            for k in range(1, IN):
                acc = acc + x_ref[b * IN + k: b * IN + k + 1, :] * params_ref[o * IN + k]
            rows.append(acc + params_ref[OUT * IN + o])

    scores = jnp.concatenate(rows, axis=0)          # (B*OUT, S), one vreg tile
    scores = jnp.maximum(scores, 0.0)               # relu

    # First-occurrence argmax over S (lane axis).
    lane_idx = lax.broadcasted_iota(jnp.int32, scores.shape, 1)   # (B*OUT, S)
    mx = jnp.max(scores, axis=-1, keepdims=True)                  # (B*OUT, 1)
    cand = jnp.where(scores == mx, lane_idx, jnp.int32(S))
    idx = jnp.min(cand, axis=-1)                                  # (B*OUT,)

    o_ref[...] = idx.reshape(1, B * OUT)            # single lane-dense store


def model_forward(x1, weight, bias):
    """x1: (B, IN, S) float32 (native torch layout, NOT pre-permuted);
    weight: (OUT, IN); bias: (OUT,). Returns (B, OUT, 1) int32 argmax indices."""
    B, IN, S = x1.shape
    OUT = weight.shape[0]

    # Pack all 9 parameter scalars into one flat SMEM buffer (native row-major
    # weight order + bias); no transposes, no broadcasts.
    params = jnp.concatenate(
        [weight.reshape(-1), bias.reshape(-1)]).astype(jnp.float32)   # (OUT*IN+OUT,)
    x2d = x1.reshape(B * IN, S)                      # free metadata reshape

    kernel = functools.partial(linear_relu_argmax_kernel, B=B, IN=IN, OUT=OUT)

    flops = 4 * B * OUT * S                          # 2 FMAs + relu + cmp per elem
    bytes_accessed = (x2d.size + params.size + B * OUT) * 4

    out2d = pl.pallas_call(
        kernel,
        out_shape=jax.ShapeDtypeStruct((1, B * OUT), jnp.int32),
        in_specs=[
            pl.BlockSpec(memory_space=pltpu.MemorySpace.SMEM),   # packed params
            pl.BlockSpec(memory_space=pltpu.MemorySpace.VMEM),   # x (whole array)
        ],
        out_specs=pl.BlockSpec(memory_space=pltpu.MemorySpace.VMEM),
        cost_estimate=pl.CostEstimate(flops=flops, transcendentals=0,
                                      bytes_accessed=bytes_accessed),
    )(params, x2d)

    # torch: unsqueeze(-1) then argmax(dim=1) -> shape (B, OUT, 1)
    return out2d.reshape(B, OUT)[:, :, None]


def _reference(x1, weight, bias):
    v1 = jnp.transpose(x1, (0, 2, 1))                 # (B, S, IN)
    v2 = v1 @ weight.T + bias                         # (B, S, OUT)
    x2 = jnp.maximum(v2, 0.0)[..., None]              # (B, S, OUT, 1)
    return jnp.argmax(x2, axis=1).astype(jnp.int32)   # (B, OUT, 1)


if __name__ == "__main__":
    key = jax.random.PRNGKey(0)
    k_x, k_w, k_b = jax.random.split(key, 3)

    B, IN, S, OUT = 2, 2, 8, 3           # Linear(2, 3) fixed by the module; small B, S
    x1 = jax.random.normal(k_x, (B, IN, S), dtype=jnp.float32)
    # deterministic "Linear(2, 3)" parameters
    weight = jax.random.normal(k_w, (OUT, IN), dtype=jnp.float32) * 0.5
    bias = jax.random.normal(k_b, (OUT,), dtype=jnp.float32) * 0.1

    out = model_forward(x1, weight, bias)
    out = jax.block_until_ready(out)

    ref = _reference(x1, weight, bias)
    assert out.shape == (B, OUT, 1), out.shape
    assert jnp.array_equal(out, ref), (out, ref)

    print("KERNEL_OK")
</pallas_src>

<mosaic_0001>
module attributes {stable_mosaic.version = 11 : i64} {
  func.func @linear_relu_argmax_kernel(%arg0: memref<9xf32, #tpu.memory_space<smem>>, %arg1: memref<4x8xf32, #tpu.memory_space<vmem>>, %arg2: memref<1x6xi32, #tpu.memory_space<vmem>>) attributes {dimension_semantics = [], scalar_prefetch = 0 : i64, scratch_operands = 0 : i64, tpu.core_type = #tpu.core_type<tc>} {
    %c0 = arith.constant 0 : index
    %c0_0 = arith.constant 0 : index
    %0 = vector.load %arg1[%c0, %c0_0] : memref<4x8xf32, #tpu.memory_space<vmem>>, vector<1x8xf32>
    %c0_1 = arith.constant 0 : index
    %1 = memref.load %arg0[%c0_1] : memref<9xf32, #tpu.memory_space<smem>>
    %2 = vector.broadcast %1 : f32 to vector<1x8xf32>
    %3 = arith.mulf %0, %2 : vector<1x8xf32>
    %c1 = arith.constant 1 : index
    %c0_2 = arith.constant 0 : index
    %4 = vector.load %arg1[%c1, %c0_2] : memref<4x8xf32, #tpu.memory_space<vmem>>, vector<1x8xf32>
    %c1_3 = arith.constant 1 : index
    %5 = memref.load %arg0[%c1_3] : memref<9xf32, #tpu.memory_space<smem>>
    %6 = vector.broadcast %5 : f32 to vector<1x8xf32>
    %7 = arith.mulf %4, %6 : vector<1x8xf32>
    %8 = arith.addf %3, %7 : vector<1x8xf32>
    %c6 = arith.constant 6 : index
    %9 = memref.load %arg0[%c6] : memref<9xf32, #tpu.memory_space<smem>>
    %10 = vector.broadcast %9 : f32 to vector<1x8xf32>
    %11 = arith.addf %8, %10 : vector<1x8xf32>
    %c0_4 = arith.constant 0 : index
    %c0_5 = arith.constant 0 : index
    %12 = vector.load %arg1[%c0_4, %c0_5] : memref<4x8xf32, #tpu.memory_space<vmem>>, vector<1x8xf32>
    %c2 = arith.constant 2 : index
    %13 = memref.load %arg0[%c2] : memref<9xf32, #tpu.memory_space<smem>>
    %14 = vector.broadcast %13 : f32 to vector<1x8xf32>
    %15 = arith.mulf %12, %14 : vector<1x8xf32>
    %c1_6 = arith.constant 1 : index
    %c0_7 = arith.constant 0 : index
    %16 = vector.load %arg1[%c1_6, %c0_7] : memref<4x8xf32, #tpu.memory_space<vmem>>, vector<1x8xf32>
    %c3 = arith.constant 3 : index
    %17 = memref.load %arg0[%c3] : memref<9xf32, #tpu.memory_space<smem>>
    %18 = vector.broadcast %17 : f32 to vector<1x8xf32>
    %19 = arith.mulf %16, %18 : vector<1x8xf32>
    %20 = arith.addf %15, %19 : vector<1x8xf32>
    %c7 = arith.constant 7 : index
    %21 = memref.load %arg0[%c7] : memref<9xf32, #tpu.memory_space<smem>>
    %22 = vector.broadcast %21 : f32 to vector<1x8xf32>
    %23 = arith.addf %20, %22 : vector<1x8xf32>
    %c0_8 = arith.constant 0 : index
    %c0_9 = arith.constant 0 : index
    %24 = vector.load %arg1[%c0_8, %c0_9] : memref<4x8xf32, #tpu.memory_space<vmem>>, vector<1x8xf32>
    %c4 = arith.constant 4 : index
    %25 = memref.load %arg0[%c4] : memref<9xf32, #tpu.memory_space<smem>>
    %26 = vector.broadcast %25 : f32 to vector<1x8xf32>
    %27 = arith.mulf %24, %26 : vector<1x8xf32>
    %c1_10 = arith.constant 1 : index
    %c0_11 = arith.constant 0 : index
    %28 = vector.load %arg1[%c1_10, %c0_11] : memref<4x8xf32, #tpu.memory_space<vmem>>, vector<1x8xf32>
    %c5 = arith.constant 5 : index
    %29 = memref.load %arg0[%c5] : memref<9xf32, #tpu.memory_space<smem>>
    %30 = vector.broadcast %29 : f32 to vector<1x8xf32>
    %31 = arith.mulf %28, %30 : vector<1x8xf32>
    %32 = arith.addf %27, %31 : vector<1x8xf32>
    %c8 = arith.constant 8 : index
    %33 = memref.load %arg0[%c8] : memref<9xf32, #tpu.memory_space<smem>>
    %34 = vector.broadcast %33 : f32 to vector<1x8xf32>
    %35 = arith.addf %32, %34 : vector<1x8xf32>
    %c2_12 = arith.constant 2 : index
    %c0_13 = arith.constant 0 : index
    %36 = vector.load %arg1[%c2_12, %c0_13] : memref<4x8xf32, #tpu.memory_space<vmem>>, vector<1x8xf32>
    %c0_14 = arith.constant 0 : index
    %37 = memref.load %arg0[%c0_14] : memref<9xf32, #tpu.memory_space<smem>>
    %38 = vector.broadcast %37 : f32 to vector<1x8xf32>
    %39 = arith.mulf %36, %38 : vector<1x8xf32>
    %c3_15 = arith.constant 3 : index
    %c0_16 = arith.constant 0 : index
    %40 = vector.load %arg1[%c3_15, %c0_16] : memref<4x8xf32, #tpu.memory_space<vmem>>, vector<1x8xf32>
    %c1_17 = arith.constant 1 : index
    %41 = memref.load %arg0[%c1_17] : memref<9xf32, #tpu.memory_space<smem>>
    %42 = vector.broadcast %41 : f32 to vector<1x8xf32>
    %43 = arith.mulf %40, %42 : vector<1x8xf32>
    %44 = arith.addf %39, %43 : vector<1x8xf32>
    %c6_18 = arith.constant 6 : index
    %45 = memref.load %arg0[%c6_18] : memref<9xf32, #tpu.memory_space<smem>>
    %46 = vector.broadcast %45 : f32 to vector<1x8xf32>
    %47 = arith.addf %44, %46 : vector<1x8xf32>
    %c2_19 = arith.constant 2 : index
    %c0_20 = arith.constant 0 : index
    %48 = vector.load %arg1[%c2_19, %c0_20] : memref<4x8xf32, #tpu.memory_space<vmem>>, vector<1x8xf32>
    %c2_21 = arith.constant 2 : index
    %49 = memref.load %arg0[%c2_21] : memref<9xf32, #tpu.memory_space<smem>>
    %50 = vector.broadcast %49 : f32 to vector<1x8xf32>
    %51 = arith.mulf %48, %50 : vector<1x8xf32>
    %c3_22 = arith.constant 3 : index
    %c0_23 = arith.constant 0 : index
    %52 = vector.load %arg1[%c3_22, %c0_23] : memref<4x8xf32, #tpu.memory_space<vmem>>, vector<1x8xf32>
    %c3_24 = arith.constant 3 : index
    %53 = memref.load %arg0[%c3_24] : memref<9xf32, #tpu.memory_space<smem>>
    %54 = vector.broadcast %53 : f32 to vector<1x8xf32>
    %55 = arith.mulf %52, %54 : vector<1x8xf32>
    %56 = arith.addf %51, %55 : vector<1x8xf32>
    %c7_25 = arith.constant 7 : index
    %57 = memref.load %arg0[%c7_25] : memref<9xf32, #tpu.memory_space<smem>>
    %58 = vector.broadcast %57 : f32 to vector<1x8xf32>
    %59 = arith.addf %56, %58 : vector<1x8xf32>
    %c2_26 = arith.constant 2 : index
    %c0_27 = arith.constant 0 : index
    %60 = vector.load %arg1[%c2_26, %c0_27] : memref<4x8xf32, #tpu.memory_space<vmem>>, vector<1x8xf32>
    %c4_28 = arith.constant 4 : index
    %61 = memref.load %arg0[%c4_28] : memref<9xf32, #tpu.memory_space<smem>>
    %62 = vector.broadcast %61 : f32 to vector<1x8xf32>
    %63 = arith.mulf %60, %62 : vector<1x8xf32>
    %c3_29 = arith.constant 3 : index
    %c0_30 = arith.constant 0 : index
    %64 = vector.load %arg1[%c3_29, %c0_30] : memref<4x8xf32, #tpu.memory_space<vmem>>, vector<1x8xf32>
    %c5_31 = arith.constant 5 : index
    %65 = memref.load %arg0[%c5_31] : memref<9xf32, #tpu.memory_space<smem>>
    %66 = vector.broadcast %65 : f32 to vector<1x8xf32>
    %67 = arith.mulf %64, %66 : vector<1x8xf32>
    %68 = arith.addf %63, %67 : vector<1x8xf32>
    %c8_32 = arith.constant 8 : index
    %69 = memref.load %arg0[%c8_32] : memref<9xf32, #tpu.memory_space<smem>>
    %70 = vector.broadcast %69 : f32 to vector<1x8xf32>
    %71 = arith.addf %68, %70 : vector<1x8xf32>
    %72 = tpu.concatenate %11, %23, %35, %47, %59, %71 in 0 : vector<1x8xf32>, vector<1x8xf32>, vector<1x8xf32>, vector<1x8xf32>, vector<1x8xf32>, vector<1x8xf32> -> vector<6x8xf32>
    %cst = arith.constant 0.000000e+00 : f32
    %73 = vector.broadcast %cst : f32 to vector<6x8xf32>
    %74 = arith.maximumf %72, %73 : vector<6x8xf32>
    %75 = tpu.iota {dimensions = array<i32: 1>} : vector<6x8xi32>
    %cst_33 = arith.constant dense<0xFF800000> : vector<6xf32>
    %76 = vector.multi_reduction <maximumf>, %74, %cst_33 [1] : vector<6x8xf32> to vector<6xf32>
    %77 = vector.shape_cast %76 : vector<6xf32> to vector<6x1xf32>
    %78 = vector.broadcast %77 : vector<6x1xf32> to vector<6x8xf32>
    %79 = arith.cmpf oeq, %74, %78 : vector<6x8xf32>
    %c8_i32 = arith.constant 8 : i32
    %80 = vector.broadcast %c8_i32 : i32 to vector<6x8xi32>
    %81 = arith.select %79, %75, %80 : vector<6x8xi1>, vector<6x8xi32>
    %cst_34 = arith.constant dense<2147483647> : vector<6xi32>
    %82 = vector.multi_reduction <minsi>, %81, %cst_34 [1] : vector<6x8xi32> to vector<6xi32>
    %83 = vector.shape_cast %82 : vector<6xi32> to vector<1x6xi32>
    %c0_35 = arith.constant 0 : index
    %c0_36 = arith.constant 0 : index
    %84 = vector.load %arg2[%c0_35, %c0_36] : memref<1x6xi32, #tpu.memory_space<vmem>>, vector<1x6xi32>
    tpu.vector_store %arg2[%c0_35, %c0_36], %83 {strides = array<i32>} : memref<1x6xi32, #tpu.memory_space<vmem>>, vector<1x6xi32>,
    return
  }
}

</mosaic_0001>

<bundles_post_ra>
// kernel: tpu_custom_call.1
= control target key start
LH: loop header
LB: loop body
LE: loop exit
PB: predicated region body
PF: predicated region fallthrough
CT: control target
= control target key end

     0   :  { %7 = vsyncpa [#allocation5], 0  ;;  %s265_s0 = inlined_call_operand.hbm [shape: f32[9], index: 0, kind: input, shape index: {}]   ;;  %s266_s1 = inlined_call_operand.hbm [shape: f32[4,8], index: 1, kind: input, shape index: {}]   ;;  %s267_s2 = inlined_call_operand.hbm [shape: s32[1,6], index: 2, kind: output, shape index: {}]  }
   0x1   :  { %8 = vsyncpa [#allocation3], 0 }
   0x2   :  { %9 = vsyncpa [#allocation4], 0  ;;  %s15_s11 = sshll.u32 %s265_s0, 4  ;;  %s24_s14 = sshll.u32 %s266_s1, 4  ;;  %s16_s11 = int_to_ptr.hbm [resolvable:$true] %s15_s11  ;;  %s25_s14 = int_to_ptr.hbm [resolvable:$true] %s24_s14 }
   0x3   :  { %s232_s15 = smov [#allocation2]   ;;  %s233_s16 = smov [#allocation6]  }
   0x4   :  { %18 = dma.hbm_to_smem %s16_s11, 16, %s232_s15, [#allocation5]  }
   0x5   :  { %s26_s17 = sshll.u32 %s233_s16, 4  ;;  %s27_s17 = int_to_ptr.vmem [resolvable:$true] %s26_s17 }
   0x6   :  { %29 = dma.hbm_to_vmem [thread:$0]  %s25_s14, 64, %s27_s17, [#allocation3]  }
   0x7   :  { %226 = dma.done.wait [#allocation5], 16  }
   0x8   :  { %227 = vsyncadd [#allocation5], 4294967280 }
   0x9   :  { %228 = dma.done.wait [#allocation3], 64  }
   0xa   :  { %229 = vsyncadd [#allocation3], 4294967232 }
   0xb   :  { %38 = sfence }
   0xc   :  { %s40_s18 = sld [smem:[#allocation2]]  ;;  %v71_v0 = vld [vmem:[#allocation6 + $0x2] sm:$0x1]  ;;  %v73_v1 = vld [vmem:[#allocation6 + $0x3] sm:$0x1]  ;;  %vm100_vm0 = vcmask 1040384   ;;  %v111_v49 = vlaneseq }
   0xd   :  { %s155_s19 = sld [smem:[#allocation2 + $0x1]]  ;;  %v39_v2 = vld [vmem:[#allocation6] sm:$0x1]  ;;  %v43_v5 = vld [vmem:[#allocation6 + $0x1] sm:$0x1]  ;;  %vm102_vm1 = vcmask 1041408  }
   0xe   :  { %s256_s0 = sld [smem:[#allocation2 + $0x6]]  ;;  %vm104_vm2 = vcmask 1042432   ;;  %vm106_vm3 = vcmask 1043456   ;;  %vm108_vm4 = vcmask 1044480   ;;  %vm113_vm5 = vcmask 62464   ;;  %s234_s25 = smov [#allocation7]  }
   0xf   :  { %s157_s20 = sld [smem:[#allocation2 + $0x2]]  ;;  %v112_v50 = vand.u32 127, %v111_v49  ;;  %s142_s26 = sshll.u32 %s234_s25, 4  ;;  %vm135_vm8 = vcmask 40960   ;;  %s143_s26 = int_to_ptr.vmem [resolvable:$true] %s142_s26 }
  0x10   :  { %s158_s21 = sld [smem:[#allocation2 + $0x3]]  ;;  %s144_s29 = sshll.u32 %s267_s2, 4  ;;  %s145_s29 = int_to_ptr.hbm [resolvable:$true] %s144_s29 }
  0x11   :  { %s258_s1 = sld [smem:[#allocation2 + $0x7]] }
  0x12   :  { %v41_v3 = vstv %s40_s18  ;;  %s160_s22 = sld [smem:[#allocation2 + $0x4]] }
  0x13   :  { %v42_v4 = vmul.f32 %v41_v3, %v39_v2  ;;  %v45_v6 = vstv %s155_s19  ;;  %s161_s23 = sld [smem:[#allocation2 + $0x5]]  ;;  %v72_v7 = vmul.f32 %v71_v0, %v41_v3 }
  0x14   :  { %v46_v8 = vmul.f32 %v45_v6, %v43_v5  ;;  %s162_s24 = sld [smem:[#allocation2 + $0x8]]  ;;  %v74_v9 = vmul.f32 %v73_v1, %v45_v6  ;;  %v49_v18 = vstv %s256_s0 }
  0x15   :  { %v52_v10 = vstv %s157_s20 }
  0x16   :  { %v47_v11 = vadd.f32 %v46_v8, %v42_v4  ;;  %v53_v12 = vmul.f32 %v52_v10, %v39_v2  ;;  %v55_v13 = vstv %s158_s21  ;;  %v75_v15 = vadd.f32 %v74_v9, %v72_v7 }
  0x17   :  { %v56_v14 = vmul.f32 %v55_v13, %v43_v5  ;;  %v77_v16 = vmul.f32 %v71_v0, %v52_v10  ;;  %v78_v17 = vmul.f32 %v73_v1, %v55_v13  ;;  %v59_v19 = vstv %s258_s1 }
  0x18   :  { %v62_v20 = vstv %s160_s22  ;;  %v50_v28 = vadd.f32 %v49_v18, %v47_v11  ;;  %v76_v31 = vadd.f32 %v75_v15, %v49_v18 }
  0x19   :  { %v57_v21 = vadd.f32 %v56_v14, %v53_v12  ;;  %v63_v22 = vmul.f32 %v62_v20, %v39_v2  ;;  %v65_v23 = vstv %s161_s23  ;;  %v79_v24 = vadd.f32 %v78_v17, %v77_v16 }
  0x1a   :  { %v66_v25 = vmul.f32 %v65_v23, %v43_v5  ;;  %v81_v26 = vmul.f32 %v71_v0, %v62_v20  ;;  %v82_v27 = vmul.f32 %v73_v1, %v65_v23  ;;  %v69_v30 = vstv %s162_s24 }
  0x1b   :  { %v60_v29 = vadd.f32 %v59_v19, %v57_v21  ;;  %v80_v33 = vadd.f32 %v79_v24, %v59_v19  ;;  %v92_v38 = vrot.slane %v76_v31, 5 }
  0x1c   :  { %v67_v32 = vadd.f32 %v66_v25, %v63_v22  ;;  %v83_v34 = vadd.f32 %v82_v27, %v81_v26 }
  0x1d   :  { %v86_v35 = vrot.slane %v60_v29, 7  ;;  %v95_v41 = vrot.slane %v80_v33, 4 }
  0x1e   :  { %v70_v36 = vadd.f32 %v69_v30, %v67_v32  ;;  %v84_v37 = vadd.f32 %v83_v34, %v69_v30 }
  0x1f   :  { %v101_v39 = vsel %vm100_vm0, %v50_v28, %v86_v35 }
  0x20   :  { %v89_v40 = vrot.slane %v70_v36, 6  ;;  %v98_v42 = vrot.slane %v84_v37, 3 }
  0x22   :  { %v103_v43 = vsel %vm102_vm1, %v101_v39, %v89_v40 }
  0x23   :  { %v105_v44 = vsel %vm104_vm2, %v103_v43, %v92_v38 }
  0x24   :  { %v107_v45 = vsel %vm106_vm3, %v105_v44, %v95_v41 }
  0x25   :  { %v109_v46 = vsel %vm108_vm4, %v107_v45, %v98_v42 }
  0x26   :  { %v110_v47 = vmax.f32 %v109_v46, 0.0 }
  0x28   :  { %v114_v48 = vsel %vm113_vm5, %v110_v47, -inf }
  0x29   :  { %115 = vmax.xlane.f32.xlu0 %v114_v48 }
  0x9c   :  { %v116_v51 = vpop.xlane.xlu0 %115 }
  0x9d   :  { %vm117_vm6 = vcmp.eq.f32.partialorder %v110_v47, %v116_v51 }
  0x9e   :  { %v118_v52 = vsel %vm117_vm6, %v112_v50, 8 }
  0x9f   :  { %v119_v53 = vsel %vm113_vm5, %v118_v52, 2147483647 }
  0xa0   :  { %v121_v54 = vshra.s32 %v119_v53, 16  ;;  %v120_v56 = vand.u32 65535, %v119_v53 }
  0xa2   :  { %v123_v55 = vcvt.s32.f32 %v121_v54  ;;  %v122_v58 = vcvt.s32.f32 %v120_v56 }
  0xa4   :  { %124 = vmin.xlane.f32.xlu0 %v123_v55 }
 0x117   :  { %v125_v57 = vpop.xlane.xlu0 %124 }
 0x118   :  { %vm126_vm7 = vcmp.eq.f32.partialorder %v123_v55, %v125_v57  ;;  %v131_v60 = vcvt.f32.s32 %v125_v57 }
 0x119   :  { %v127_v59 = vsel %vm126_vm7, %v122_v58, inf }
 0x11a   :  { %128 = vmin.xlane.f32.xlu1 %v127_v59  ;;  %v132_v62 = vshll.u32 %v131_v60, 16 }
 0x18d   :  { %v129_v61 = vpop.xlane.xlu1 %128 }
 0x18e   :  { %v130_v63 = vcvt.f32.s32 %v129_v61 }
 0x190   :  { %v133_v0 = vadd.s32 %v132_v62, %v130_v63 }
 0x192   :  { %v134_v1 = vperm.slane %v133_v0, %v112_v50 }
 0x194   :  { %136 = vst.msk [vmem:[#allocation7] sm:$0x1] %vm135_vm8, %v134_v1 }
 0x195   :  { %147 = dma.vmem_to_hbm [thread:$0]  %s143_s26, 16, %s145_s29, [#allocation4]  }
 0x196   :  { %230 = dma.done.wait [#allocation4], 16  }
 0x197   :  { %231 = vsyncadd [#allocation4], 4294967280 }
 0x198   :  { %152 = vsyncpa [#allocation3], 1 }
 0x199   :  { %153 = vsyncpa [#allocation4], 1 }
 0x19a   :  { %154 = vsyncpa [#allocation5], 1 }

</bundles_post_ra>
